<compile_context>
chip_gen: v5e
topology: v5e:2x2
jax: 0.10.0
libtpu: 0.0.40
codegen_flags: <defaults>
</compile_context>

<pallas_src>
import math

import jax
import jax.numpy as jnp
from jax import lax
from jax.experimental import pallas as pl
from jax.experimental.pallas import tpu as pltpu


LANE = 128      # vreg lane width
SUBLANE = 8     # f32 sublane width


def _round_up(x, m):
    return ((x + m - 1) // m) * m


def _pad2(a, rows, cols):
    r, c = a.shape
    return jnp.pad(a, ((0, rows - r), (0, cols - c)))


def _vmem_spec():
    return pl.BlockSpec(memory_space=pltpu.MemorySpace.VMEM)


def _vmem_cap_bytes():
    """85% of physical per-core VMEM (generation-aware); safe fallback."""
    try:
        return int(0.85 * pltpu.get_tpu_info().vmem_capacity_bytes)
    except Exception:
        return 48 << 20


# ----------------------------- fused kernel --------------------------------

def _make_simclr_kernel(num_layers, n_real):
    """Fused GIN encoder (num_layers) + global_add_pool + projection head."""

    def kernel(adj_ref, assign_ref, x_ref,
               w1_ref, b1_ref, w2_ref, b2_ref, gamma_ref, beta_ref,
               pw1_ref, pb1_ref, pw2_ref, pb2_ref,
               out_ref):
        bf16 = jnp.bfloat16
        n_pad = adj_ref.shape[0]

        adj = adj_ref[...]          # [Np, Np] bf16: A + I (GIN eps=0), zero-padded
        assign = assign_ref[...]    # [Gp, Np] bf16: one-hot pooling matrix P[g, i]

        # Mask of real nodes so zero-padded rows never pollute BN statistics.
        node_mask = (lax.broadcasted_iota(jnp.int32, (n_pad, 1), 0) < n_real
                     ).astype(jnp.float32)
        inv_n = jnp.float32(1.0 / n_real)

        # Loop-carried node features live in bf16 only: they are consumed
        # exclusively as MXU operands (adjacency matmul + pooling matmul).
        hb = x_ref[...]                                  # [Np, P] bf16
        # Running accumulator for proj_head's first Linear:
        #   concat_l(pool_l) @ PW1  ==  sum_l pool_l @ PW1[l]
        t = jnp.zeros(out_ref.shape, jnp.float32)        # [Gp, EP]

        # Static unroll: fine at small num_layers (good LLO visibility).
        # TODO(synk): switch to lax.fori_loop carrying (hb, t) if num_layers > ~5.
        for l in range(num_layers):
            # ---- GINConv (eps=0): MLP( (A + I) @ h ) -----------------------
            agg = jnp.dot(adj, hb, preferred_element_type=jnp.float32)
            z = jnp.dot(agg.astype(bf16), w1_ref[l],
                        preferred_element_type=jnp.float32) + b1_ref[l]
            z = jnp.maximum(z, 0.0)
            z = jnp.dot(z.astype(bf16), w2_ref[l],
                        preferred_element_type=jnp.float32) + b2_ref[l]
            # Encoder: x = relu(conv(x))
            z = jnp.maximum(z, 0.0)

            # ---- BatchNorm1d, training mode, biased variance (two-pass) ----
            zm = z * node_mask
            mean = jnp.sum(zm, axis=0, keepdims=True) * inv_n
            d = (z - mean) * node_mask
            var = jnp.sum(d * d, axis=0, keepdims=True) * inv_n
            z = (z - mean) * lax.rsqrt(var + 1e-5) * gamma_ref[l] + beta_ref[l]

            # Single f32->bf16 cast per layer; reused by pooling AND next layer.
            hb = (z * node_mask).astype(bf16)            # padded rows stay 0

            # ---- global_add_pool + proj_head first Linear ------------------
            pooled = jnp.dot(assign, hb,
                             preferred_element_type=jnp.float32)   # [Gp, P]
            t = t + jnp.dot(pooled.astype(bf16), pw1_ref[l],
                            preferred_element_type=jnp.float32)

        # ---- projection head: Linear -> ReLU -> Linear ----------------------
        t = jnp.maximum(t + pb1_ref[...], 0.0)
        out_ref[...] = jnp.dot(t.astype(bf16), pw2_ref[...],
                               preferred_element_type=jnp.float32) + pb2_ref[...]

    return kernel


# ----------------------------- wrapper --------------------------------------

def simclr_forward(params, x, edge_index, batch, num_graphs, n_aug=0):
    """simclr.forward: fused GIN encoder + global_add_pool + proj_head[n_aug]."""
    L = params["num_layers"]
    P = params["p_hidden"]
    E = params["embedding_dim"]
    EP = params["p_embedding"]
    enc = params["encoder"]
    head = params["proj_heads"][n_aug]

    n = x.shape[0]
    n_pad = _round_up(max(n, SUBLANE), SUBLANE)
    g_pad = _round_up(max(num_graphs, SUBLANE), SUBLANE)

    # ---- glue (plain JAX): dense A + I and one-hot pooling matrix ----------
    # Built directly in bf16: 0/1 and small integer edge counts are exact in
    # bf16, and this avoids an O(N^2) f32 scatter + separate cast pass.
    node_valid = (jnp.arange(n_pad) < n).astype(jnp.bfloat16)
    adj = jnp.zeros((n_pad, n_pad), jnp.bfloat16)
    adj = adj.at[edge_index[1], edge_index[0]].add(jnp.bfloat16(1.0))  # j -> i
    adj_b = adj + jnp.diag(node_valid)                   # GIN eps=0 self loops
    assign_b = _pad2(
        (batch[None, :] == jnp.arange(num_graphs)[:, None]).astype(jnp.bfloat16),
        g_pad, n_pad)
    # Node features: only ever consumed as MXU operands -> pass as bf16.
    x_b = _pad2(x.astype(jnp.bfloat16), n_pad, P)

    operands = (adj_b, assign_b, x_b,
                enc["w1"], enc["b1"], enc["w2"], enc["b2"],
                enc["gamma"], enc["beta"],
                head["w1"], head["b1"], head["w2"], head["b2"])

    # Explicit VMEM budget: resident operands + output + activation working
    # set + headroom. No grid -> nothing is double-buffered -> no 2x factor.
    resident = sum(int(a.size) * a.dtype.itemsize for a in operands)
    resident += g_pad * EP * 4                 # output
    working = 6 * n_pad * P * 4                # live f32/bf16 activations
    vmem_limit = min(resident + working + (4 << 20), _vmem_cap_bytes())

    kernel = _make_simclr_kernel(L, n)
    out = pl.pallas_call(
        kernel,
        out_shape=jax.ShapeDtypeStruct((g_pad, EP), jnp.float32),
        in_specs=[_vmem_spec()] * len(operands),
        out_specs=_vmem_spec(),
        compiler_params=pltpu.CompilerParams(vmem_limit_bytes=int(vmem_limit)),
    )(*operands)

    return out[:num_graphs, :E]


# ----------------------------- param init -----------------------------------

def xavier_uniform(key, fan_in, fan_out):
    limit = math.sqrt(6.0 / (fan_in + fan_out))
    # stored as [in, out] so the kernel computes x @ W (== x @ W_torch.T)
    return jax.random.uniform(key, (fan_in, fan_out), jnp.float32,
                              minval=-limit, maxval=limit)


def init_params(key, num_features, hidden_dim, num_layers, num_heads=5):
    P = LANE
    assert num_features <= P and hidden_dim <= P
    E = hidden_dim * num_layers
    EP = _round_up(E, LANE)

    # Encoder weights, zero-padded to [P, P] and stacked over layers.
    w1s, w2s = [], []
    for i in range(num_layers):
        in_dim = num_features if i == 0 else hidden_dim
        key, k1, k2 = jax.random.split(key, 3)
        w1s.append(_pad2(xavier_uniform(k1, in_dim, hidden_dim), P, P))
        w2s.append(_pad2(xavier_uniform(k2, hidden_dim, hidden_dim), P, P))
    encoder = dict(
        w1=jnp.stack(w1s).astype(jnp.bfloat16),
        w2=jnp.stack(w2s).astype(jnp.bfloat16),
        b1=jnp.zeros((num_layers, 1, P), jnp.float32),
        b2=jnp.zeros((num_layers, 1, P), jnp.float32),
        gamma=jnp.ones((num_layers, 1, P), jnp.float32),
        beta=jnp.zeros((num_layers, 1, P), jnp.float32),
    )

    # Projection heads: first Linear is stored per layer-block [L, P, EP] so the
    # kernel can accumulate pooled_l @ W1[l] without materializing the concat.
    proj_heads = []
    for _ in range(num_heads):
        key, k1, k2 = jax.random.split(key, 3)
        w1_real = xavier_uniform(k1, E, E)
        w2_real = xavier_uniform(k2, E, E)
        blocks = []
        for l in range(num_layers):
            blk = jnp.zeros((P, EP), jnp.float32)
            blk = blk.at[:hidden_dim, :E].set(
                w1_real[l * hidden_dim:(l + 1) * hidden_dim, :])
            blocks.append(blk)
        proj_heads.append(dict(
            w1=jnp.stack(blocks).astype(jnp.bfloat16),
            b1=jnp.zeros((1, EP), jnp.float32),
            w2=_pad2(w2_real, EP, EP).astype(jnp.bfloat16),
            b2=jnp.zeros((1, EP), jnp.float32),
        ))

    return dict(encoder=encoder, proj_heads=proj_heads,
                num_layers=num_layers, num_features=num_features,
                hidden_dim=hidden_dim, p_hidden=P,
                embedding_dim=E, p_embedding=EP)


# ----------------------------- demo ------------------------------------------

if __name__ == "__main__":
    key = jax.random.PRNGKey(0)

    # Small synthetic graph batch: 2 graphs x 8 nodes = 16 nodes.
    num_features = 8
    hidden_dim = 32
    num_layers = 3
    nodes_per_graph = 8
    num_graphs = 2
    num_nodes = nodes_per_graph * num_graphs

    key, kx, kp = jax.random.split(key, 3)
    x = jax.random.normal(kx, (num_nodes, num_features), jnp.float32)

    # edge_index: undirected ring inside each graph (both directions listed).
    src, dst = [], []
    for g in range(num_graphs):
        off = g * nodes_per_graph
        for i in range(nodes_per_graph):
            j = (i + 1) % nodes_per_graph
            src += [off + i, off + j]
            dst += [off + j, off + i]
    edge_index = jnp.array([src, dst], dtype=jnp.int32)            # [2, E]
    batch = jnp.repeat(jnp.arange(num_graphs, dtype=jnp.int32),
                       nodes_per_graph)                             # [N]

    params = init_params(kp, num_features, hidden_dim, num_layers)

    y = simclr_forward(params, x, edge_index, batch, num_graphs, n_aug=0)
    y = jax.block_until_ready(y)

    assert y.shape == (num_graphs, hidden_dim * num_layers)
    assert bool(jnp.all(jnp.isfinite(y)))
    print("KERNEL_OK")
</pallas_src>

<mosaic_0001>
module attributes {stable_mosaic.version = 11 : i64} {
  func.func @kernel(%arg0: memref<16x16xbf16, #tpu.memory_space<vmem>>, %arg1: memref<8x16xbf16, #tpu.memory_space<vmem>>, %arg2: memref<16x128xbf16, #tpu.memory_space<vmem>>, %arg3: memref<3x128x128xbf16, #tpu.memory_space<vmem>>, %arg4: memref<3x1x128xf32, #tpu.memory_space<vmem>>, %arg5: memref<3x128x128xbf16, #tpu.memory_space<vmem>>, %arg6: memref<3x1x128xf32, #tpu.memory_space<vmem>>, %arg7: memref<3x1x128xf32, #tpu.memory_space<vmem>>, %arg8: memref<3x1x128xf32, #tpu.memory_space<vmem>>, %arg9: memref<3x128x128xbf16, #tpu.memory_space<vmem>>, %arg10: memref<1x128xf32, #tpu.memory_space<vmem>>, %arg11: memref<128x128xbf16, #tpu.memory_space<vmem>>, %arg12: memref<1x128xf32, #tpu.memory_space<vmem>>, %arg13: memref<8x128xf32, #tpu.memory_space<vmem>>) attributes {dimension_semantics = [], scalar_prefetch = 0 : i64, scratch_operands = 0 : i64, tpu.core_type = #tpu.core_type<tc>} {
    %c0 = arith.constant 0 : index
    %c0_0 = arith.constant 0 : index
    %0 = vector.load %arg0[%c0, %c0_0] : memref<16x16xbf16, #tpu.memory_space<vmem>>, vector<16x16xbf16>
    %c0_1 = arith.constant 0 : index
    %c0_2 = arith.constant 0 : index
    %1 = vector.load %arg1[%c0_1, %c0_2] : memref<8x16xbf16, #tpu.memory_space<vmem>>, vector<8x16xbf16>
    %2 = tpu.iota {dimensions = array<i32: 0>} : vector<16x1xi32>
    %c16_i32 = arith.constant 16 : i32
    %3 = vector.broadcast %c16_i32 : i32 to vector<16x1xi32>
    %4 = arith.cmpi slt, %2, %3 : vector<16x1xi32>
    %5 = arith.extui %4 : vector<16x1xi1> to vector<16x1xi32>
    %6 = arith.sitofp %5 : vector<16x1xi32> to vector<16x1xf32>
    %c0_3 = arith.constant 0 : index
    %c0_4 = arith.constant 0 : index
    %7 = vector.load %arg2[%c0_3, %c0_4] : memref<16x128xbf16, #tpu.memory_space<vmem>>, vector<16x128xbf16>
    %cst = arith.constant 0.000000e+00 : f32
    %8 = vector.broadcast %cst : f32 to vector<8x128xf32>
    %cst_5 = arith.constant dense<0.000000e+00> : vector<16x128xf32>
    %9 = tpu.matmul %0, %7, %cst_5 {dimension_numbers = #tpu.dot_dimension_numbers<[1], [0], [0], [1], [0, 0, 1, 1], [], []>} : vector<16x16xbf16>, vector<16x128xbf16>, vector<16x128xf32> -> vector<16x128xf32>
    %10 = arith.truncf %9 : vector<16x128xf32> to vector<16x128xbf16>
    %c0_6 = arith.constant 0 : index
    %c0_7 = arith.constant 0 : index
    %c0_8 = arith.constant 0 : index
    %11 = vector.load %arg3[%c0_6, %c0_7, %c0_8] : memref<3x128x128xbf16, #tpu.memory_space<vmem>>, vector<1x128x128xbf16>
    %12 = vector.shape_cast %11 : vector<1x128x128xbf16> to vector<128x128xbf16>
    %cst_9 = arith.constant dense<0.000000e+00> : vector<16x128xf32>
    %13 = tpu.matmul %10, %12, %cst_9 {dimension_numbers = #tpu.dot_dimension_numbers<[1], [0], [0], [1], [0, 0, 1, 1], [], []>} : vector<16x128xbf16>, vector<128x128xbf16>, vector<16x128xf32> -> vector<16x128xf32>
    %c0_10 = arith.constant 0 : index
    %c0_11 = arith.constant 0 : index
    %c0_12 = arith.constant 0 : index
    %14 = vector.load %arg4[%c0_10, %c0_11, %c0_12] : memref<3x1x128xf32, #tpu.memory_space<vmem>>, vector<1x1x128xf32>
    %15 = vector.shape_cast %14 : vector<1x1x128xf32> to vector<1x128xf32>
    %16 = vector.broadcast %15 : vector<1x128xf32> to vector<16x128xf32>
    %17 = arith.addf %13, %16 : vector<16x128xf32>
    %cst_13 = arith.constant 0.000000e+00 : f32
    %18 = vector.broadcast %cst_13 : f32 to vector<16x128xf32>
    %19 = arith.maximumf %17, %18 : vector<16x128xf32>
    %20 = arith.truncf %19 : vector<16x128xf32> to vector<16x128xbf16>
    %c0_14 = arith.constant 0 : index
    %c0_15 = arith.constant 0 : index
    %c0_16 = arith.constant 0 : index
    %21 = vector.load %arg5[%c0_14, %c0_15, %c0_16] : memref<3x128x128xbf16, #tpu.memory_space<vmem>>, vector<1x128x128xbf16>
    %22 = vector.shape_cast %21 : vector<1x128x128xbf16> to vector<128x128xbf16>
    %cst_17 = arith.constant dense<0.000000e+00> : vector<16x128xf32>
    %23 = tpu.matmul %20, %22, %cst_17 {dimension_numbers = #tpu.dot_dimension_numbers<[1], [0], [0], [1], [0, 0, 1, 1], [], []>} : vector<16x128xbf16>, vector<128x128xbf16>, vector<16x128xf32> -> vector<16x128xf32>
    %c0_18 = arith.constant 0 : index
    %c0_19 = arith.constant 0 : index
    %c0_20 = arith.constant 0 : index
    %24 = vector.load %arg6[%c0_18, %c0_19, %c0_20] : memref<3x1x128xf32, #tpu.memory_space<vmem>>, vector<1x1x128xf32>
    %25 = vector.shape_cast %24 : vector<1x1x128xf32> to vector<1x128xf32>
    %26 = vector.broadcast %25 : vector<1x128xf32> to vector<16x128xf32>
    %27 = arith.addf %23, %26 : vector<16x128xf32>
    %cst_21 = arith.constant 0.000000e+00 : f32
    %28 = vector.broadcast %cst_21 : f32 to vector<16x128xf32>
    %29 = arith.maximumf %27, %28 : vector<16x128xf32>
    %30 = vector.broadcast %6 : vector<16x1xf32> to vector<16x128xf32>
    %31 = arith.mulf %29, %30 : vector<16x128xf32>
    %cst_22 = arith.constant dense<0.000000e+00> : vector<128xf32>
    %32 = vector.multi_reduction <add>, %31, %cst_22 [0] : vector<16x128xf32> to vector<128xf32>
    %33 = vector.shape_cast %32 : vector<128xf32> to vector<1x128xf32>
    %cst_23 = arith.constant 6.250000e-02 : f32
    %34 = vector.broadcast %cst_23 : f32 to vector<1x128xf32>
    %35 = arith.mulf %33, %34 : vector<1x128xf32>
    %36 = vector.broadcast %35 : vector<1x128xf32> to vector<16x128xf32>
    %37 = arith.subf %29, %36 : vector<16x128xf32>
    %38 = vector.broadcast %6 : vector<16x1xf32> to vector<16x128xf32>
    %39 = arith.mulf %37, %38 : vector<16x128xf32>
    %40 = arith.mulf %39, %39 : vector<16x128xf32>
    %cst_24 = arith.constant dense<0.000000e+00> : vector<128xf32>
    %41 = vector.multi_reduction <add>, %40, %cst_24 [0] : vector<16x128xf32> to vector<128xf32>
    %42 = vector.shape_cast %41 : vector<128xf32> to vector<1x128xf32>
    %cst_25 = arith.constant 6.250000e-02 : f32
    %43 = vector.broadcast %cst_25 : f32 to vector<1x128xf32>
    %44 = arith.mulf %42, %43 : vector<1x128xf32>
    %45 = vector.broadcast %35 : vector<1x128xf32> to vector<16x128xf32>
    %46 = arith.subf %29, %45 : vector<16x128xf32>
    %cst_26 = arith.constant 9.99999974E-6 : f32
    %47 = vector.broadcast %cst_26 : f32 to vector<1x128xf32>
    %48 = arith.addf %44, %47 : vector<1x128xf32>
    %49 = math.rsqrt %48 : vector<1x128xf32>
    %50 = vector.broadcast %49 : vector<1x128xf32> to vector<16x128xf32>
    %51 = arith.mulf %46, %50 : vector<16x128xf32>
    %c0_27 = arith.constant 0 : index
    %c0_28 = arith.constant 0 : index
    %c0_29 = arith.constant 0 : index
    %52 = vector.load %arg7[%c0_27, %c0_28, %c0_29] : memref<3x1x128xf32, #tpu.memory_space<vmem>>, vector<1x1x128xf32>
    %53 = vector.shape_cast %52 : vector<1x1x128xf32> to vector<1x128xf32>
    %54 = vector.broadcast %53 : vector<1x128xf32> to vector<16x128xf32>
    %55 = arith.mulf %51, %54 : vector<16x128xf32>
    %c0_30 = arith.constant 0 : index
    %c0_31 = arith.constant 0 : index
    %c0_32 = arith.constant 0 : index
    %56 = vector.load %arg8[%c0_30, %c0_31, %c0_32] : memref<3x1x128xf32, #tpu.memory_space<vmem>>, vector<1x1x128xf32>
    %57 = vector.shape_cast %56 : vector<1x1x128xf32> to vector<1x128xf32>
    %58 = vector.broadcast %57 : vector<1x128xf32> to vector<16x128xf32>
    %59 = arith.addf %55, %58 : vector<16x128xf32>
    %60 = vector.broadcast %6 : vector<16x1xf32> to vector<16x128xf32>
    %61 = arith.mulf %59, %60 : vector<16x128xf32>
    %62 = arith.truncf %61 : vector<16x128xf32> to vector<16x128xbf16>
    %cst_33 = arith.constant dense<0.000000e+00> : vector<8x128xf32>
    %63 = tpu.matmul %1, %62, %cst_33 {dimension_numbers = #tpu.dot_dimension_numbers<[1], [0], [0], [1], [0, 0, 1, 1], [], []>} : vector<8x16xbf16>, vector<16x128xbf16>, vector<8x128xf32> -> vector<8x128xf32>
    %64 = arith.truncf %63 : vector<8x128xf32> to vector<8x128xbf16>
    %c0_34 = arith.constant 0 : index
    %c0_35 = arith.constant 0 : index
    %c0_36 = arith.constant 0 : index
    %65 = vector.load %arg9[%c0_34, %c0_35, %c0_36] : memref<3x128x128xbf16, #tpu.memory_space<vmem>>, vector<1x128x128xbf16>
    %66 = vector.shape_cast %65 : vector<1x128x128xbf16> to vector<128x128xbf16>
    %cst_37 = arith.constant dense<0.000000e+00> : vector<8x128xf32>
    %67 = tpu.matmul %64, %66, %cst_37 {dimension_numbers = #tpu.dot_dimension_numbers<[1], [0], [0], [1], [0, 0, 1, 1], [], []>} : vector<8x128xbf16>, vector<128x128xbf16>, vector<8x128xf32> -> vector<8x128xf32>
    %68 = arith.addf %8, %67 : vector<8x128xf32>
    %cst_38 = arith.constant dense<0.000000e+00> : vector<16x128xf32>
    %69 = tpu.matmul %0, %62, %cst_38 {dimension_numbers = #tpu.dot_dimension_numbers<[1], [0], [0], [1], [0, 0, 1, 1], [], []>} : vector<16x16xbf16>, vector<16x128xbf16>, vector<16x128xf32> -> vector<16x128xf32>
    %70 = arith.truncf %69 : vector<16x128xf32> to vector<16x128xbf16>
    %c1 = arith.constant 1 : index
    %c0_39 = arith.constant 0 : index
    %c0_40 = arith.constant 0 : index
    %71 = vector.load %arg3[%c1, %c0_39, %c0_40] : memref<3x128x128xbf16, #tpu.memory_space<vmem>>, vector<1x128x128xbf16>
    %72 = vector.shape_cast %71 : vector<1x128x128xbf16> to vector<128x128xbf16>
    %cst_41 = arith.constant dense<0.000000e+00> : vector<16x128xf32>
    %73 = tpu.matmul %70, %72, %cst_41 {dimension_numbers = #tpu.dot_dimension_numbers<[1], [0], [0], [1], [0, 0, 1, 1], [], []>} : vector<16x128xbf16>, vector<128x128xbf16>, vector<16x128xf32> -> vector<16x128xf32>
    %c1_42 = arith.constant 1 : index
    %c0_43 = arith.constant 0 : index
    %c0_44 = arith.constant 0 : index
    %74 = vector.load %arg4[%c1_42, %c0_43, %c0_44] : memref<3x1x128xf32, #tpu.memory_space<vmem>>, vector<1x1x128xf32>
    %75 = vector.shape_cast %74 : vector<1x1x128xf32> to vector<1x128xf32>
    %76 = vector.broadcast %75 : vector<1x128xf32> to vector<16x128xf32>
    %77 = arith.addf %73, %76 : vector<16x128xf32>
    %cst_45 = arith.constant 0.000000e+00 : f32
    %78 = vector.broadcast %cst_45 : f32 to vector<16x128xf32>
    %79 = arith.maximumf %77, %78 : vector<16x128xf32>
    %80 = arith.truncf %79 : vector<16x128xf32> to vector<16x128xbf16>
    %c1_46 = arith.constant 1 : index
    %c0_47 = arith.constant 0 : index
    %c0_48 = arith.constant 0 : index
    %81 = vector.load %arg5[%c1_46, %c0_47, %c0_48] : memref<3x128x128xbf16, #tpu.memory_space<vmem>>, vector<1x128x128xbf16>
    %82 = vector.shape_cast %81 : vector<1x128x128xbf16> to vector<128x128xbf16>
    %cst_49 = arith.constant dense<0.000000e+00> : vector<16x128xf32>
    %83 = tpu.matmul %80, %82, %cst_49 {dimension_numbers = #tpu.dot_dimension_numbers<[1], [0], [0], [1], [0, 0, 1, 1], [], []>} : vector<16x128xbf16>, vector<128x128xbf16>, vector<16x128xf32> -> vector<16x128xf32>
    %c1_50 = arith.constant 1 : index
    %c0_51 = arith.constant 0 : index
    %c0_52 = arith.constant 0 : index
    %84 = vector.load %arg6[%c1_50, %c0_51, %c0_52] : memref<3x1x128xf32, #tpu.memory_space<vmem>>, vector<1x1x128xf32>
    %85 = vector.shape_cast %84 : vector<1x1x128xf32> to vector<1x128xf32>
    %86 = vector.broadcast %85 : vector<1x128xf32> to vector<16x128xf32>
    %87 = arith.addf %83, %86 : vector<16x128xf32>
    %cst_53 = arith.constant 0.000000e+00 : f32
    %88 = vector.broadcast %cst_53 : f32 to vector<16x128xf32>
    %89 = arith.maximumf %87, %88 : vector<16x128xf32>
    %90 = vector.broadcast %6 : vector<16x1xf32> to vector<16x128xf32>
    %91 = arith.mulf %89, %90 : vector<16x128xf32>
    %cst_54 = arith.constant dense<0.000000e+00> : vector<128xf32>
    %92 = vector.multi_reduction <add>, %91, %cst_54 [0] : vector<16x128xf32> to vector<128xf32>
    %93 = vector.shape_cast %92 : vector<128xf32> to vector<1x128xf32>
    %cst_55 = arith.constant 6.250000e-02 : f32
    %94 = vector.broadcast %cst_55 : f32 to vector<1x128xf32>
    %95 = arith.mulf %93, %94 : vector<1x128xf32>
    %96 = vector.broadcast %95 : vector<1x128xf32> to vector<16x128xf32>
    %97 = arith.subf %89, %96 : vector<16x128xf32>
    %98 = vector.broadcast %6 : vector<16x1xf32> to vector<16x128xf32>
    %99 = arith.mulf %97, %98 : vector<16x128xf32>
    %100 = arith.mulf %99, %99 : vector<16x128xf32>
    %cst_56 = arith.constant dense<0.000000e+00> : vector<128xf32>
    %101 = vector.multi_reduction <add>, %100, %cst_56 [0] : vector<16x128xf32> to vector<128xf32>
    %102 = vector.shape_cast %101 : vector<128xf32> to vector<1x128xf32>
    %cst_57 = arith.constant 6.250000e-02 : f32
    %103 = vector.broadcast %cst_57 : f32 to vector<1x128xf32>
    %104 = arith.mulf %102, %103 : vector<1x128xf32>
    %105 = vector.broadcast %95 : vector<1x128xf32> to vector<16x128xf32>
    %106 = arith.subf %89, %105 : vector<16x128xf32>
    %cst_58 = arith.constant 9.99999974E-6 : f32
    %107 = vector.broadcast %cst_58 : f32 to vector<1x128xf32>
    %108 = arith.addf %104, %107 : vector<1x128xf32>
    %109 = math.rsqrt %108 : vector<1x128xf32>
    %110 = vector.broadcast %109 : vector<1x128xf32> to vector<16x128xf32>
    %111 = arith.mulf %106, %110 : vector<16x128xf32>
    %c1_59 = arith.constant 1 : index
    %c0_60 = arith.constant 0 : index
    %c0_61 = arith.constant 0 : index
    %112 = vector.load %arg7[%c1_59, %c0_60, %c0_61] : memref<3x1x128xf32, #tpu.memory_space<vmem>>, vector<1x1x128xf32>
    %113 = vector.shape_cast %112 : vector<1x1x128xf32> to vector<1x128xf32>
    %114 = vector.broadcast %113 : vector<1x128xf32> to vector<16x128xf32>
    %115 = arith.mulf %111, %114 : vector<16x128xf32>
    %c1_62 = arith.constant 1 : index
    %c0_63 = arith.constant 0 : index
    %c0_64 = arith.constant 0 : index
    %116 = vector.load %arg8[%c1_62, %c0_63, %c0_64] : memref<3x1x128xf32, #tpu.memory_space<vmem>>, vector<1x1x128xf32>
    %117 = vector.shape_cast %116 : vector<1x1x128xf32> to vector<1x128xf32>
    %118 = vector.broadcast %117 : vector<1x128xf32> to vector<16x128xf32>
    %119 = arith.addf %115, %118 : vector<16x128xf32>
    %120 = vector.broadcast %6 : vector<16x1xf32> to vector<16x128xf32>
    %121 = arith.mulf %119, %120 : vector<16x128xf32>
    %122 = arith.truncf %121 : vector<16x128xf32> to vector<16x128xbf16>
    %cst_65 = arith.constant dense<0.000000e+00> : vector<8x128xf32>
    %123 = tpu.matmul %1, %122, %cst_65 {dimension_numbers = #tpu.dot_dimension_numbers<[1], [0], [0], [1], [0, 0, 1, 1], [], []>} : vector<8x16xbf16>, vector<16x128xbf16>, vector<8x128xf32> -> vector<8x128xf32>
    %124 = arith.truncf %123 : vector<8x128xf32> to vector<8x128xbf16>
    %c1_66 = arith.constant 1 : index
    %c0_67 = arith.constant 0 : index
    %c0_68 = arith.constant 0 : index
    %125 = vector.load %arg9[%c1_66, %c0_67, %c0_68] : memref<3x128x128xbf16, #tpu.memory_space<vmem>>, vector<1x128x128xbf16>
    %126 = vector.shape_cast %125 : vector<1x128x128xbf16> to vector<128x128xbf16>
    %cst_69 = arith.constant dense<0.000000e+00> : vector<8x128xf32>
    %127 = tpu.matmul %124, %126, %cst_69 {dimension_numbers = #tpu.dot_dimension_numbers<[1], [0], [0], [1], [0, 0, 1, 1], [], []>} : vector<8x128xbf16>, vector<128x128xbf16>, vector<8x128xf32> -> vector<8x128xf32>
    %128 = arith.addf %68, %127 : vector<8x128xf32>
    %cst_70 = arith.constant dense<0.000000e+00> : vector<16x128xf32>
    %129 = tpu.matmul %0, %122, %cst_70 {dimension_numbers = #tpu.dot_dimension_numbers<[1], [0], [0], [1], [0, 0, 1, 1], [], []>} : vector<16x16xbf16>, vector<16x128xbf16>, vector<16x128xf32> -> vector<16x128xf32>
    %130 = arith.truncf %129 : vector<16x128xf32> to vector<16x128xbf16>
    %c2 = arith.constant 2 : index
    %c0_71 = arith.constant 0 : index
    %c0_72 = arith.constant 0 : index
    %131 = vector.load %arg3[%c2, %c0_71, %c0_72] : memref<3x128x128xbf16, #tpu.memory_space<vmem>>, vector<1x128x128xbf16>
    %132 = vector.shape_cast %131 : vector<1x128x128xbf16> to vector<128x128xbf16>
    %cst_73 = arith.constant dense<0.000000e+00> : vector<16x128xf32>
    %133 = tpu.matmul %130, %132, %cst_73 {dimension_numbers = #tpu.dot_dimension_numbers<[1], [0], [0], [1], [0, 0, 1, 1], [], []>} : vector<16x128xbf16>, vector<128x128xbf16>, vector<16x128xf32> -> vector<16x128xf32>
    %c2_74 = arith.constant 2 : index
    %c0_75 = arith.constant 0 : index
    %c0_76 = arith.constant 0 : index
    %134 = vector.load %arg4[%c2_74, %c0_75, %c0_76] : memref<3x1x128xf32, #tpu.memory_space<vmem>>, vector<1x1x128xf32>
    %135 = vector.shape_cast %134 : vector<1x1x128xf32> to vector<1x128xf32>
    %136 = vector.broadcast %135 : vector<1x128xf32> to vector<16x128xf32>
    %137 = arith.addf %133, %136 : vector<16x128xf32>
    %cst_77 = arith.constant 0.000000e+00 : f32
    %138 = vector.broadcast %cst_77 : f32 to vector<16x128xf32>
    %139 = arith.maximumf %137, %138 : vector<16x128xf32>
    %140 = arith.truncf %139 : vector<16x128xf32> to vector<16x128xbf16>
    %c2_78 = arith.constant 2 : index
    %c0_79 = arith.constant 0 : index
    %c0_80 = arith.constant 0 : index
    %141 = vector.load %arg5[%c2_78, %c0_79, %c0_80] : memref<3x128x128xbf16, #tpu.memory_space<vmem>>, vector<1x128x128xbf16>
    %142 = vector.shape_cast %141 : vector<1x128x128xbf16> to vector<128x128xbf16>
    %cst_81 = arith.constant dense<0.000000e+00> : vector<16x128xf32>
    %143 = tpu.matmul %140, %142, %cst_81 {dimension_numbers = #tpu.dot_dimension_numbers<[1], [0], [0], [1], [0, 0, 1, 1], [], []>} : vector<16x128xbf16>, vector<128x128xbf16>, vector<16x128xf32> -> vector<16x128xf32>
    %c2_82 = arith.constant 2 : index
    %c0_83 = arith.constant 0 : index
    %c0_84 = arith.constant 0 : index
    %144 = vector.load %arg6[%c2_82, %c0_83, %c0_84] : memref<3x1x128xf32, #tpu.memory_space<vmem>>, vector<1x1x128xf32>
    %145 = vector.shape_cast %144 : vector<1x1x128xf32> to vector<1x128xf32>
    %146 = vector.broadcast %145 : vector<1x128xf32> to vector<16x128xf32>
    %147 = arith.addf %143, %146 : vector<16x128xf32>
    %cst_85 = arith.constant 0.000000e+00 : f32
    %148 = vector.broadcast %cst_85 : f32 to vector<16x128xf32>
    %149 = arith.maximumf %147, %148 : vector<16x128xf32>
    %150 = vector.broadcast %6 : vector<16x1xf32> to vector<16x128xf32>
    %151 = arith.mulf %149, %150 : vector<16x128xf32>
    %cst_86 = arith.constant dense<0.000000e+00> : vector<128xf32>
    %152 = vector.multi_reduction <add>, %151, %cst_86 [0] : vector<16x128xf32> to vector<128xf32>
    %153 = vector.shape_cast %152 : vector<128xf32> to vector<1x128xf32>
    %cst_87 = arith.constant 6.250000e-02 : f32
    %154 = vector.broadcast %cst_87 : f32 to vector<1x128xf32>
    %155 = arith.mulf %153, %154 : vector<1x128xf32>
    %156 = vector.broadcast %155 : vector<1x128xf32> to vector<16x128xf32>
    %157 = arith.subf %149, %156 : vector<16x128xf32>
    %158 = vector.broadcast %6 : vector<16x1xf32> to vector<16x128xf32>
    %159 = arith.mulf %157, %158 : vector<16x128xf32>
    %160 = arith.mulf %159, %159 : vector<16x128xf32>
    %cst_88 = arith.constant dense<0.000000e+00> : vector<128xf32>
    %161 = vector.multi_reduction <add>, %160, %cst_88 [0] : vector<16x128xf32> to vector<128xf32>
    %162 = vector.shape_cast %161 : vector<128xf32> to vector<1x128xf32>
    %cst_89 = arith.constant 6.250000e-02 : f32
    %163 = vector.broadcast %cst_89 : f32 to vector<1x128xf32>
    %164 = arith.mulf %162, %163 : vector<1x128xf32>
    %165 = vector.broadcast %155 : vector<1x128xf32> to vector<16x128xf32>
    %166 = arith.subf %149, %165 : vector<16x128xf32>
    %cst_90 = arith.constant 9.99999974E-6 : f32
    %167 = vector.broadcast %cst_90 : f32 to vector<1x128xf32>
    %168 = arith.addf %164, %167 : vector<1x128xf32>
    %169 = math.rsqrt %168 : vector<1x128xf32>
    %170 = vector.broadcast %169 : vector<1x128xf32> to vector<16x128xf32>
    %171 = arith.mulf %166, %170 : vector<16x128xf32>
    %c2_91 = arith.constant 2 : index
    %c0_92 = arith.constant 0 : index
    %c0_93 = arith.constant 0 : index
    %172 = vector.load %arg7[%c2_91, %c0_92, %c0_93] : memref<3x1x128xf32, #tpu.memory_space<vmem>>, vector<1x1x128xf32>
    %173 = vector.shape_cast %172 : vector<1x1x128xf32> to vector<1x128xf32>
    %174 = vector.broadcast %173 : vector<1x128xf32> to vector<16x128xf32>
    %175 = arith.mulf %171, %174 : vector<16x128xf32>
    %c2_94 = arith.constant 2 : index
    %c0_95 = arith.constant 0 : index
    %c0_96 = arith.constant 0 : index
    %176 = vector.load %arg8[%c2_94, %c0_95, %c0_96] : memref<3x1x128xf32, #tpu.memory_space<vmem>>, vector<1x1x128xf32>
    %177 = vector.shape_cast %176 : vector<1x1x128xf32> to vector<1x128xf32>
    %178 = vector.broadcast %177 : vector<1x128xf32> to vector<16x128xf32>
    %179 = arith.addf %175, %178 : vector<16x128xf32>
    %180 = vector.broadcast %6 : vector<16x1xf32> to vector<16x128xf32>
    %181 = arith.mulf %179, %180 : vector<16x128xf32>
    %182 = arith.truncf %181 : vector<16x128xf32> to vector<16x128xbf16>
    %cst_97 = arith.constant dense<0.000000e+00> : vector<8x128xf32>
    %183 = tpu.matmul %1, %182, %cst_97 {dimension_numbers = #tpu.dot_dimension_numbers<[1], [0], [0], [1], [0, 0, 1, 1], [], []>} : vector<8x16xbf16>, vector<16x128xbf16>, vector<8x128xf32> -> vector<8x128xf32>
    %184 = arith.truncf %183 : vector<8x128xf32> to vector<8x128xbf16>
    %c2_98 = arith.constant 2 : index
    %c0_99 = arith.constant 0 : index
    %c0_100 = arith.constant 0 : index
    %185 = vector.load %arg9[%c2_98, %c0_99, %c0_100] : memref<3x128x128xbf16, #tpu.memory_space<vmem>>, vector<1x128x128xbf16>
    %186 = vector.shape_cast %185 : vector<1x128x128xbf16> to vector<128x128xbf16>
    %cst_101 = arith.constant dense<0.000000e+00> : vector<8x128xf32>
    %187 = tpu.matmul %184, %186, %cst_101 {dimension_numbers = #tpu.dot_dimension_numbers<[1], [0], [0], [1], [0, 0, 1, 1], [], []>} : vector<8x128xbf16>, vector<128x128xbf16>, vector<8x128xf32> -> vector<8x128xf32>
    %188 = arith.addf %128, %187 : vector<8x128xf32>
    %c0_102 = arith.constant 0 : index
    %c0_103 = arith.constant 0 : index
    %189 = vector.load %arg10[%c0_102, %c0_103] : memref<1x128xf32, #tpu.memory_space<vmem>>, vector<1x128xf32>
    %190 = vector.broadcast %189 : vector<1x128xf32> to vector<8x128xf32>
    %191 = arith.addf %188, %190 : vector<8x128xf32>
    %cst_104 = arith.constant 0.000000e+00 : f32
    %192 = vector.broadcast %cst_104 : f32 to vector<8x128xf32>
    %193 = arith.maximumf %191, %192 : vector<8x128xf32>
    %194 = arith.truncf %193 : vector<8x128xf32> to vector<8x128xbf16>
    %c0_105 = arith.constant 0 : index
    %c0_106 = arith.constant 0 : index
    %195 = vector.load %arg11[%c0_105, %c0_106] : memref<128x128xbf16, #tpu.memory_space<vmem>>, vector<128x128xbf16>
    %cst_107 = arith.constant dense<0.000000e+00> : vector<8x128xf32>
    %196 = tpu.matmul %194, %195, %cst_107 {dimension_numbers = #tpu.dot_dimension_numbers<[1], [0], [0], [1], [0, 0, 1, 1], [], []>} : vector<8x128xbf16>, vector<128x128xbf16>, vector<8x128xf32> -> vector<8x128xf32>
    %c0_108 = arith.constant 0 : index
    %c0_109 = arith.constant 0 : index
    %197 = vector.load %arg12[%c0_108, %c0_109] : memref<1x128xf32, #tpu.memory_space<vmem>>, vector<1x128xf32>
    %198 = vector.broadcast %197 : vector<1x128xf32> to vector<8x128xf32>
    %199 = arith.addf %196, %198 : vector<8x128xf32>
    %c0_110 = arith.constant 0 : index
    %c0_111 = arith.constant 0 : index
    %200 = vector.load %arg13[%c0_110, %c0_111] : memref<8x128xf32, #tpu.memory_space<vmem>>, vector<8x128xf32>
    tpu.vector_store %arg13[%c0_110, %c0_111], %199 {strides = array<i32>} : memref<8x128xf32, #tpu.memory_space<vmem>>, vector<8x128xf32>,
    return
  }
}

</mosaic_0001>

<bundles_post_ra>
// kernel: tpu_custom_call.1
= control target key start
LH: loop header
LB: loop body
LE: loop exit
PB: predicated region body
PF: predicated region fallthrough
CT: control target
= control target key end

     0   :  { %18 = vsyncpa [#allocation3], 0  ;;  %s2212_s0 = inlined_call_operand.hbm [shape: bf16[16,16], index: 0, kind: input, shape index: {}]   ;;  %s2213_s1 = inlined_call_operand.hbm [shape: bf16[8,16], index: 1, kind: input, shape index: {}]   ;;  %s2214_s2 = inlined_call_operand.hbm [shape: bf16[16,128], index: 2, kind: input, shape index: {}]   ;;  %s2215_s3 = inlined_call_operand.hbm [shape: bf16[3,128,128], index: 3, kind: input, shape index: {}]   ;;  %s2216_s4 = inlined_call_operand.vmem [shape: f32[3,1,128], index: 4, kind: input, shape index: {}]   ;;  %s2217_s5 = inlined_call_operand.hbm [shape: bf16[3,128,128], index: 5, kind: input, shape index: {}]   ;;  %s2218_s6 = inlined_call_operand.hbm [shape: f32[3,1,128], index: 6, kind: input, shape index: {}]   ;;  %s2219_s7 = inlined_call_operand.vmem [shape: f32[3,1,128], index: 7, kind: input, shape index: {}]   ;;  %s2220_s8 = inlined_call_operand.hbm [shape: f32[3,1,128], index: 8, kind: input, shape index: {}]   ;;  %s2221_s9 = inlined_call_operand.hbm [shape: bf16[3,128,128], index: 9, kind: input, shape index: {}]   ;;  %s2222_s10 = inlined_call_operand.vmem [shape: f32[1,128], index: 10, kind: input, shape index: {}]   ;;  %s2223_s11 = inlined_call_operand.hbm [shape: bf16[128,128], index: 11, kind: input, shape index: {}]   ;;  %s2224_s12 = inlined_call_operand.vmem [shape: f32[1,128], index: 12, kind: input, shape index: {}]   ;;  %s2225_s13 = inlined_call_operand.hbm [shape: f32[8,128], index: 13, kind: output, shape index: {}]  }
   0x1   :  { %19 = vsyncpa [#allocation6], 0 }
   0x2   :  { %20 = vsyncpa [#allocation9], 0 }
   0x3   :  { %21 = vsyncpa [#allocation12], 0 }
   0x4   :  { %22 = vsyncpa [#allocation15], 0  ;;  %s42_s27 = sshll.u32 %s2213_s1, 4  ;;  %s43_s27 = int_to_ptr.hbm [resolvable:$true] %s42_s27 }
   0x5   :  { %23 = vsyncpa [#allocation4], 0  ;;  %s2028_s28 = smov [#allocation5]   ;;  %s65_s15 = sshll.u32 %s2215_s3, 4  ;;  %s66_s15 = int_to_ptr.hbm [resolvable:$true] %s65_s15 }
   0x6   :  { %s44_s29 = sshll.u32 %s2028_s28, 4  ;;  %s2029_s16 = smov [#allocation8]   ;;  %s45_s29 = int_to_ptr.vmem [resolvable:$true] %s44_s29 }
   0x7   :  { %47 = dma.hbm_to_vmem [thread:$0]  %s43_s27, 64, %s45_s29, [#allocation6]  }
   0x8   :  { %s67_s17 = sshll.u32 %s2029_s16, 4  ;;  %s93_s20 = sshll.u32 %s2218_s6, 4  ;;  %s68_s17 = int_to_ptr.vmem [resolvable:$true] %s67_s17  ;;  %s94_s20 = int_to_ptr.hbm [resolvable:$true] %s93_s20 }
   0x9   :  { %s2030_s1 = smov 64   ;;  %s2031_s21 = smov 4  }
   0xa   :  { %73 = dma.hbm_to_vmem [thread:$0]  %s66_s15, 3072, %s68_s17, [#allocation9], %s2030_s1, %s2030_s1, %s2031_s21  }
   0xb   :  { %s2032_s22 = smov [#allocation11]   ;;  %s121_s25 = sshll.u32 %s2221_s9, 4  ;;  %s122_s25 = int_to_ptr.hbm [resolvable:$true] %s121_s25 }
   0xc   :  { %s95_s23 = sshll.u32 %s2032_s22, 4  ;;  %s2033_s26 = smov 16   ;;  %s96_s23 = int_to_ptr.vmem [resolvable:$true] %s95_s23 }
   0xd   :  { %s2034_s27 = smov 1   ;;  %s2035_s6 = smov [#allocation14]  }
   0xe   :  { %101 = dma.hbm_to_vmem [thread:$0]  %s94_s20, 48, %s96_s23, [#allocation12], %s2033_s26, %s2033_s26, %s2034_s27  }
   0xf   :  { %s123_s28 = sshll.u32 %s2035_s6, 4  ;;  %s28_s14 = sshll.u32 %s2212_s0, 4  ;;  %s124_s28 = int_to_ptr.vmem [resolvable:$true] %s123_s28  ;;  %s29_s14 = int_to_ptr.hbm [resolvable:$true] %s28_s14 }
  0x10   :  { %129 = dma.hbm_to_vmem [thread:$0]  %s122_s25, 3072, %s124_s28, [#allocation15], %s2030_s1, %s2030_s1, %s2031_s21  }
  0x11   :  { %s52_s16 = sshll.u32 %s2214_s2, 4  ;;  %s2036_s17 = smov [#allocation2]   ;;  %s53_s16 = int_to_ptr.hbm [resolvable:$true] %s52_s16 }
  0x12   :  { %s30_s18 = sshll.u32 %s2036_s17, 4  ;;  %s2037_s19 = smov [#allocation7]   ;;  %s31_s18 = int_to_ptr.vmem [resolvable:$true] %s30_s18 }
  0x13   :  { %36 = dma.hbm_to_vmem [thread:$0]  %s29_s14, 128, %s31_s18, [#allocation3], %s2030_s1, %s2030_s1, %s2031_s21  }
  0x14   :  { %s54_s0 = sshll.u32 %s2037_s19, 4  ;;  %s80_s23 = sshll.u32 %s2217_s5, 4  ;;  %s55_s0 = int_to_ptr.vmem [resolvable:$true] %s54_s0  ;;  %s81_s23 = int_to_ptr.hbm [resolvable:$true] %s80_s23 }
  0x15   :  { %60 = dma.hbm_to_vmem [thread:$0]  %s53_s16, 128, %s55_s0, [#allocation6], %s2030_s1, %s2030_s1, %s2031_s21  }
  0x16   :  { %s108_s3 = sshll.u32 %s2220_s8, 4  ;;  %s2038_s25 = smov [#allocation10]   ;;  %s109_s3 = int_to_ptr.hbm [resolvable:$true] %s108_s3 }
  0x17   :  { %s82_s6 = sshll.u32 %s2038_s25, 4  ;;  %s2039_s28 = smov [#allocation13]   ;;  %s83_s6 = int_to_ptr.vmem [resolvable:$true] %s82_s6 }
  0x18   :  { %88 = dma.hbm_to_vmem [thread:$0]  %s81_s23, 3072, %s83_s6, [#allocation9], %s2030_s1, %s2030_s1, %s2031_s21  }
  0x19   :  { %s110_s5 = sshll.u32 %s2039_s28, 4  ;;  %s136_s14 = sshll.u32 %s2223_s11, 4  ;;  %s111_s5 = int_to_ptr.vmem [resolvable:$true] %s110_s5  ;;  %s137_s14 = int_to_ptr.hbm [resolvable:$true] %s136_s14 }
  0x1a   :  { %116 = dma.hbm_to_vmem [thread:$0]  %s109_s3, 48, %s111_s5, [#allocation12], %s2033_s26, %s2033_s26, %s2034_s27  }
  0x1b   :  { %s2040_s8 = smov [#allocation16]  }
  0x1c   :  { %s138_s9 = sshll.u32 %s2040_s8, 4  ;;  %s139_s9 = int_to_ptr.vmem [resolvable:$true] %s138_s9 }
  0x1d   :  { %144 = dma.hbm_to_vmem [thread:$0]  %s137_s14, 1024, %s139_s9, [#allocation15], %s2030_s1, %s2030_s1, %s2031_s21  }
  0x1e   :  { %2016 = dma.done.wait [#allocation3], 128  }
  0x1f   :  { %2017 = vsyncadd [#allocation3], 4294967168 }
  0x20   :  { %2018 = dma.done.wait [#allocation6], 192  }
  0x21   :  { %2019 = vsyncadd [#allocation6], 4294967104 }
  0x22   :  { %2020 = dma.done.wait [#allocation9], 6144  }
  0x23   :  { %2021 = vsyncadd [#allocation9], 4294961152 }
  0x24   :  { %2022 = dma.done.wait [#allocation12], 96  }
  0x25   :  { %2023 = vsyncadd [#allocation12], 4294967200 }
  0x26   :  { %2024 = dma.done.wait [#allocation15], 4096  }
  0x27   :  { %2025 = vsyncadd [#allocation15], 4294963200  ;;  %v1661_v0 = vld [vmem:[#allocation7] sm:$0xff]  ;;  %v2163_v2 = vld [vmem:[#allocation2] sm:$0xff]  ;;  %vm209_vm0 = vcmask 130048   ;;  %s2041_s2 = smov [#allocation17]  }
  0x28   :  { %v1669_v1 = vld [vmem:[#allocation8 + $0x38] sm:$0xff]  ;;  %220 = vmatpush.bf16.msra.mxu0 %v1661_v0  ;;  %v1668_v3 = vld [vmem:[#allocation8 + $0x30] sm:$0xff]  ;;  %v1667_v4 = vld [vmem:[#allocation8 + $0x28] sm:$0xff]  ;;  %s1306_s24 = sshll.u32 %s2041_s2, 4  ;;  %s1308_s6 = sshll.u32 %s2225_s13, 4  ;;  %s1307_s24 = int_to_ptr.vmem [resolvable:$true] %s1306_s24  ;;  %s1309_s6 = int_to_ptr.hbm [resolvable:$true] %s1308_s6 }
  0x29   :  { %296 = vmatpush.bf16.msra.mxu1 %v1669_v1  ;;  %v1666_v5 = vld [vmem:[#allocation8 + $0x20] sm:$0xff]  ;;  %v1665_v6 = vld [vmem:[#allocation8 + $0x18] sm:$0xff]  ;;  %v1664_v7 = vld [vmem:[#allocation8 + $0x10] sm:$0xff] }
  0x2a   :  { %v1663_v8 = vld [vmem:[#allocation8 + $0x8] sm:$0xff]  ;;  %v1662_v9 = vld [vmem:[#allocation8] sm:$0xff]  ;;  %v1677_v10 = vld [vmem:[#allocation10 + $0x38] sm:$0xff] }
  0x2b   :  { %1330 = vmatmul.msk.bf16.vlgmr.msra.gmra.mxu0 %vm209_vm0, %v2163_v2  ;;  %381 = vmatpush.bf16.msra.mxu2 %v1677_v10  ;;  %v1676_v11 = vld [vmem:[#allocation10 + $0x30] sm:$0xff]  ;;  %v1675_v12 = vld [vmem:[#allocation10 + $0x28] sm:$0xff]  ;;  %v1674_v13 = vld [vmem:[#allocation10 + $0x20] sm:$0xff] }
  0x2c   :  { %v1673_v17 = vld [vmem:[#allocation10 + $0x18] sm:$0xff]  ;;  %v1672_v18 = vld [vmem:[#allocation10 + $0x10] sm:$0xff]  ;;  %v1671_v19 = vld [vmem:[#allocation10 + $0x8] sm:$0xff] }
  0x2d   :  { %297 = vmatpush.bf16.msra.mxu1 %v1668_v3  ;;  %v1670_v20 = vld [vmem:[#allocation10] sm:$0xff]  ;;  %v1756_v22 = vld [vmem:[%s2216_s4] ss:$0 sm:$0xff] }
  0x2e   :  { %v1757_v30 = vld [vmem:[#allocation11] ss:$0 sm:$0xff]  ;;  %v1758_v63 = vld [vmem:[%s2219_s7] ss:$0 sm:$0xff] }
  0x2f   :  { %382 = vmatpush.bf16.msra.mxu2 %v1676_v11  ;;  %v2173_v11 = vld [vmem:[#allocation5] sm:$0xf] }
  0x31   :  { %298 = vmatpush.bf16.msra.mxu1 %v1667_v4  ;;  %v1759_v4 = vld [vmem:[#allocation13] ss:$0 sm:$0xff] }
  0x33   :  { %383 = vmatpush.bf16.msra.mxu2 %v1675_v12  ;;  %v1692_v12 = vld [vmem:[#allocation8 + $0x70] sm:$0xff] }
  0x35   :  { %299 = vmatpush.bf16.msra.mxu1 %v1666_v5 }
  0x37   :  { %384 = vmatpush.bf16.msra.mxu2 %v1674_v13  ;;  %v1691_v13 = vld [vmem:[#allocation8 + $0x68] sm:$0xff] }
  0x39   :  { %300 = vmatpush.bf16.msra.mxu1 %v1665_v6 }
  0x3b   :  { %385 = vmatpush.bf16.msra.mxu2 %v1673_v17  ;;  %v1687_v17 = vld [vmem:[#allocation8 + $0x48] sm:$0xff] }
  0x3d   :  { %301 = vmatpush.bf16.msra.mxu1 %v1664_v7 }
  0x3f   :  { %386 = vmatpush.bf16.msra.mxu2 %v1672_v18  ;;  %v1686_v18 = vld [vmem:[#allocation8 + $0x40] sm:$0xff] }
  0x41   :  { %302 = vmatpush.bf16.msra.mxu1 %v1663_v8 }
  0x43   :  { %387 = vmatpush.bf16.msra.mxu2 %v1671_v19  ;;  %v1685_v19 = vld [vmem:[#allocation14 + $0x38] sm:$0xff] }
  0x45   :  { %303 = vmatpush.bf16.msra.mxu1 %v1662_v9  ;;  %v1693_v9 = vld [vmem:[#allocation8 + $0x78] sm:$0xff] }
  0x47   :  { %388 = vmatpush.bf16.msra.mxu2 %v1670_v20  ;;  %v1684_v20 = vld [vmem:[#allocation14 + $0x30] sm:$0xff] }
  0xa8   :  { %v222_v14 = vpop.f32.mrf.mxu0 }
  0xb0   :  { %v224_v15 = vpop.f32.mrf.mxu0 }
  0xb1   :  { %v227_v16 = vpack.c.bf16 %v224_v15, %v222_v14  ;;  %v1690_v14 = vld [vmem:[#allocation8 + $0x60] sm:$0xff]  ;;  %v1689_v15 = vld [vmem:[#allocation8 + $0x58] sm:$0xff] }
  0xb3   :  { %304 = vmatmul.bf16.vlgmr.msra.gmra.mxu1 %v227_v16  ;;  %v1688_v16 = vld [vmem:[#allocation8 + $0x50] sm:$0xff] }
 0x130   :  { %v305_v21 = vpop.f32.mrf.mxu1 }
 0x131   :  { %v306_v23 = vadd.f32 %v1756_v22, %v305_v21  ;;  %v1683_v21 = vld [vmem:[#allocation14 + $0x28] sm:$0xff] }
 0x133   :  { %v310_v26 = vmax.f32 %v306_v23, 0.0  ;;  %v1681_v23 = vld [vmem:[#allocation14 + $0x18] sm:$0xff] }
 0x138   :  { %v307_v24 = vpop.f32.mrf.mxu1 }
 0x139   :  { %v308_v25 = vadd.f32 %v1756_v22, %v307_v24  ;;  %v1682_v22 = vld [vmem:[#allocation14 + $0x20] sm:$0xff]  ;;  %v1701_v24 = vld [vmem:[#allocation10 + $0x78] sm:$0xff] }
 0x13b   :  { %v311_v27 = vmax.f32 %v308_v25, 0.0  ;;  %v1680_v25 = vld [vmem:[#allocation14 + $0x10] sm:$0xff] }
 0x13d   :  { %v312_v28 = vpack.c.bf16 %v311_v27, %v310_v26  ;;  %v1700_v26 = vld [vmem:[#allocation10 + $0x70] sm:$0xff] }
 0x13f   :  { %389 = vmatmul.bf16.vlgmr.msra.gmra.mxu2 %v312_v28  ;;  %v1679_v28 = vld [vmem:[#allocation14 + $0x8] sm:$0xff] }
 0x1c2   :  { %v390_v29 = vpop.f32.mrf.mxu2 }
 0x1c3   :  { %v391_v31 = vadd.f32 %v1757_v30, %v390_v29  ;;  %v1699_v29 = vld [vmem:[#allocation10 + $0x68] sm:$0xff] }
 0x1c5   :  { %v395_v34 = vmax.f32 %v391_v31, 0.0  ;;  %v1698_v31 = vld [vmem:[#allocation10 + $0x60] sm:$0xff] }
 0x1ca   :  { %v392_v32 = vpop.f32.mrf.mxu2 }
 0x1cb   :  { %v393_v33 = vadd.f32 %v1757_v30, %v392_v32  ;;  %v1678_v30 = vld [vmem:[#allocation14] sm:$0xff] }
 0x1cd   :  { %v396_v35 = vmax.f32 %v393_v33, 0.0 }
 0x1cf   :  { %v399_v36 = vadd.f32 %v396_v35, %v395_v34 }
 0x1d1   :  { %v400_v37 = vrot.slane %v399_v36, 4 }
 0x1d3   :  { %v401_v38 = vadd.f32 %v400_v37, %v399_v36  ;;  %v1697_v37 = vld [vmem:[#allocation10 + $0x58] sm:$0xff] }
 0x1d5   :  { %v402_v39 = vrot.slane %v401_v38, 2 }
 0x1d7   :  { %v403_v40 = vadd.f32 %v402_v39, %v401_v38  ;;  %v1696_v38 = vld [vmem:[#allocation10 + $0x50] sm:$0xff]  ;;  %v1695_v39 = vld [vmem:[#allocation10 + $0x48] sm:$0xff] }
 0x1d9   :  { %v404_v41 = vrot.slane %v403_v40, 1 }
 0x1db   :  { %v405_v42 = vadd.f32 %v404_v41, %v403_v40  ;;  %v1694_v40 = vld [vmem:[#allocation10 + $0x40] sm:$0xff] }
 0x1dd   :  { %v406_v43 = vmul.f32 0.0625, %v405_v42  ;;  %v1760_v42 = vld [vmem:[%s2216_s4 + $0x1] ss:$0 sm:$0xff] }
 0x1df   :  { %v407_v44 = vsub.f32 %v395_v34, %v406_v43  ;;  %v408_v45 = vsub.f32 %v396_v35, %v406_v43 }
 0x1e1   :  { %v411_v46 = vmul.f32 %v407_v44, %v407_v44  ;;  %v412_v47 = vmul.f32 %v408_v45, %v408_v45 }
 0x1e3   :  { %v413_v48 = vadd.f32 %v412_v47, %v411_v46 }
 0x1e5   :  { %v414_v49 = vrot.slane %v413_v48, 4 }
 0x1e7   :  { %v415_v50 = vadd.f32 %v414_v49, %v413_v48 }
 0x1e9   :  { %v416_v51 = vrot.slane %v415_v50, 2 }
 0x1eb   :  { %v417_v52 = vadd.f32 %v416_v51, %v415_v50 }
 0x1ed   :  { %v418_v53 = vrot.slane %v417_v52, 1 }
 0x1ef   :  { %v419_v54 = vadd.f32 %v418_v53, %v417_v52  ;;  %v1761_v52 = vld [vmem:[#allocation11 + $0x1] ss:$0 sm:$0xff] }
 0x1f1   :  { %v420_v55 = vmul.f32 0.0625, %v419_v54 }
 0x1f3   :  { %v421_v56 = vadd.f32 1e-05, %v420_v55 }
 0x1f5   :  { %1770 = vrsqrt.f32 %v421_v56  ;;  %vm428_vm2 = vweird.f32 %v421_v56 }
 0x1fb   :  { %v1771_v57 = vpop.eup %1770 }
 0x1fc   :  { %v423_v58 = vmul.f32 %v1771_v57, %v421_v56  ;;  %vm429_vm1 = vweird.f32 %v1771_v57 }
 0x1fd   :  { %vm430_vm3 = vmor %vm428_vm2, %vm429_vm1 }
 0x1fe   :  { %v424_v59 = vmul.f32 %v1771_v57, %v423_v58 }
 0x200   :  { %v425_v60 = vmul.f32 0.5, %v424_v59 }
 0x202   :  { %v426_v61 = vsub.f32 1.5, %v425_v60 }
 0x204   :  { %v427_v62 = vmul.f32 %v1771_v57, %v426_v61 }
 0x206   :  { %v431_v0 = vsel %vm430_vm3, %v1771_v57, %v427_v62 }
 0x207   :  { %v432_v1 = vmul.f32 %v431_v0, %v407_v44  ;;  %v433_v3 = vmul.f32 %v431_v0, %v408_v45 }
 0x209   :  { %v438_v5 = vmul.f32 %v1758_v63, %v432_v1  ;;  %v439_v6 = vmul.f32 %v1758_v63, %v433_v3 }
 0x20b   :  { %v444_v7 = vadd.f32 %v1759_v4, %v438_v5  ;;  %v445_v8 = vadd.f32 %v1759_v4, %v439_v6 }
 0x20d   :  { %v448_v10 = vpack.c.bf16 %v445_v8, %v444_v7 }
 0x20f   :  { %459 = vmatpush.bf16.msra.mxu3 %v448_v10  ;;  %489 = vmatpush.bf16.msrb.mxu0 %v448_v10 }
 0x212   :  { %1396 = vmatmul.msk.bf16.vlgmr.msrb.gmra.mxu0 %vm209_vm0, %v2163_v2  ;;  %1395 = vmatmul.msk.bf16.vlgmr.msra.gmra.mxu3 %vm209_vm0, %v2173_v11 }
 0x213   :  { %567 = vmatpush.bf16.msrb.mxu3 %v1693_v9  ;;  %654 = vmatpush.bf16.msra.mxu0 %v1701_v24  ;;  %v1708_v24 = vld [vmem:[#allocation14 + $0x70] sm:$0xff] }
 0x217   :  { %568 = vmatpush.bf16.msrb.mxu3 %v1692_v12  ;;  %655 = vmatpush.bf16.msra.mxu0 %v1700_v26  ;;  %v1762_v26 = vld [vmem:[%s2219_s7 + $0x1] ss:$0 sm:$0xff] }
 0x21b   :  { %569 = vmatpush.bf16.msrb.mxu3 %v1691_v13  ;;  %656 = vmatpush.bf16.msra.mxu0 %v1699_v29 }
 0x21f   :  { %570 = vmatpush.bf16.msrb.mxu3 %v1690_v14  ;;  %657 = vmatpush.bf16.msra.mxu0 %v1698_v31  ;;  %v1707_v31 = vld [vmem:[#allocation14 + $0x68] sm:$0xff] }
 0x223   :  { %571 = vmatpush.bf16.msrb.mxu3 %v1689_v15  ;;  %658 = vmatpush.bf16.msra.mxu0 %v1697_v37 }
 0x227   :  { %572 = vmatpush.bf16.msrb.mxu3 %v1688_v16  ;;  %659 = vmatpush.bf16.msra.mxu0 %v1696_v38  ;;  %v1705_v38 = vld [vmem:[#allocation14 + $0x58] sm:$0xff] }
 0x22b   :  { %573 = vmatpush.bf16.msrb.mxu3 %v1687_v17  ;;  %660 = vmatpush.bf16.msra.mxu0 %v1695_v39  ;;  %v1704_v39 = vld [vmem:[#allocation14 + $0x50] sm:$0xff] }
 0x22f   :  { %574 = vmatpush.bf16.msrb.mxu3 %v1686_v18  ;;  %661 = vmatpush.bf16.msra.mxu0 %v1694_v40  ;;  %v1703_v40 = vld [vmem:[#allocation14 + $0x48] sm:$0xff] }
 0x233   :  { %864 = vmatpush.bf16.msra.mxu3 %v1685_v19 }
 0x237   :  { %865 = vmatpush.bf16.msra.mxu3 %v1684_v20 }
 0x23b   :  { %866 = vmatpush.bf16.msra.mxu3 %v1683_v21 }
 0x23f   :  { %867 = vmatpush.bf16.msra.mxu3 %v1682_v22  ;;  %v1709_v22 = vld [vmem:[#allocation14 + $0x78] sm:$0xff] }
 0x240   :  { %803 = vmatpush.bf16.msrb.mxu2 %v1709_v22 }
 0x243   :  { %868 = vmatpush.bf16.msra.mxu3 %v1681_v23 }
 0x244   :  { %804 = vmatpush.bf16.msrb.mxu2 %v1708_v24 }
 0x247   :  { %869 = vmatpush.bf16.msra.mxu3 %v1680_v25  ;;  %v1717_v25 = vld [vmem:[#allocation8 + $0xb8] sm:$0xff] }
 0x248   :  { %962 = vmatpush.bf16.msrb.mxu0 %v1717_v25  ;;  %805 = vmatpush.bf16.msrb.mxu2 %v1707_v31 }
 0x24b   :  { %870 = vmatpush.bf16.msra.mxu3 %v1679_v28 }
 0x24f   :  { %871 = vmatpush.bf16.msra.mxu3 %v1678_v30  ;;  %v1763_v30 = vld [vmem:[#allocation13 + $0x1] ss:$0 sm:$0xff] }
 0x28f   :  { %v491_v27 = vpop.f32.mrf.mxu0 }
 0x295   :  { %v461_v32 = vpop.f32.mrf.mxu3 }
 0x296   :  { %v465_v36 = vpack.c.bf16 %v461_v32, %v461_v32 }
 0x297   :  { %v493_v33 = vpop.f32.mrf.mxu0 }
 0x298   :  { %v496_v34 = vpack.c.bf16 %v493_v33, %v491_v27 }
 0x29a   :  { %575 = vmatmul.bf16.vlgmr.msrb.gmra.mxu3 %v496_v34 }
 0x29d   :  { %v463_v35 = vpop.f32.mrf.mxu3 }
 0x2aa   :  { %872 = vmatmul.bf16.vlgmr.msra.gmra.mxu3 %v465_v36  ;;  %v1706_v36 = vld [vmem:[#allocation14 + $0x60] sm:$0xff] }
 0x2ab   :  { %806 = vmatpush.bf16.msrb.mxu2 %v1706_v36 }
 0x2af   :  { %807 = vmatpush.bf16.msrb.mxu2 %v1705_v38  ;;  %v1733_v38 = vld [vmem:[#allocation14 + $0xb8] sm:$0xff] }
 0x2b0   :  { %1198 = vmatpush.bf16.msrb.mxu3 %v1733_v38 }
 0x2b3   :  { %808 = vmatpush.bf16.msrb.mxu2 %v1704_v39 }
 0x2b7   :  { %809 = vmatpush.bf16.msrb.mxu2 %v1703_v40  ;;  %v1732_v40 = vld [vmem:[#allocation14 + $0xb0] sm:$0xff] }
 0x2b8   :  { %1199 = vmatpush.bf16.msrb.mxu3 %v1732_v40 }
 0x31d   :  { %v576_v41 = vpop.f32.mrf.mxu3 }
 0x31e   :  { %v577_v43 = vadd.f32 %v1760_v42, %v576_v41  ;;  %v1702_v41 = vld [vmem:[#allocation14 + $0x40] sm:$0xff] }
 0x31f   :  { %810 = vmatpush.bf16.msrb.mxu2 %v1702_v41  ;;  %v1731_v41 = vld [vmem:[#allocation14 + $0xa8] sm:$0xff] }
 0x320   :  { %v581_v46 = vmax.f32 %v577_v43, 0.0  ;;  %v1715_v43 = vld [vmem:[#allocation8 + $0xa8] sm:$0xff]  ;;  %1200 = vmatpush.bf16.msrb.mxu3 %v1731_v41 }
 0x325   :  { %v578_v44 = vpop.f32.mrf.mxu3 }
 0x326   :  { %v579_v45 = vadd.f32 %v1760_v42, %v578_v44  ;;  %v1716_v42 = vld [vmem:[#allocation8 + $0xb0] sm:$0xff]  ;;  %v1714_v44 = vld [vmem:[#allocation8 + $0xa0] sm:$0xff] }
 0x327   :  { %963 = vmatpush.bf16.msrb.mxu0 %v1716_v42 }
 0x328   :  { %v582_v47 = vmax.f32 %v579_v45, 0.0  ;;  %v1713_v45 = vld [vmem:[#allocation8 + $0x98] sm:$0xff] }
 0x32a   :  { %v583_v48 = vpack.c.bf16 %v582_v47, %v581_v46  ;;  %v1712_v46 = vld [vmem:[#allocation8 + $0x90] sm:$0xff]  ;;  %v1711_v47 = vld [vmem:[#allocation8 + $0x88] sm:$0xff] }
 0x32b   :  { %964 = vmatpush.bf16.msrb.mxu0 %v1715_v43 }
 0x32c   :  { %662 = vmatmul.bf16.vlgmr.msra.gmra.mxu0 %v583_v48  ;;  %v1710_v48 = vld [vmem:[#allocation8 + $0x80] sm:$0xff] }
 0x32d   :  { %v2182_v49 = vpop.f32.mrf.mxu3 }
 0x32f   :  { %965 = vmatpush.bf16.msrb.mxu0 %v1714_v44  ;;  %v1730_v44 = vld [vmem:[#allocation14 + $0xa0] sm:$0xff] }
 0x330   :  { %1201 = vmatpush.bf16.msrb.mxu3 %v1730_v44 }
 0x333   :  { %966 = vmatpush.bf16.msrb.mxu0 %v1713_v45 }
 0x335   :  { %v875_v50 = vpop.f32.mrf.mxu3 }
 0x337   :  { %967 = vmatpush.bf16.msrb.mxu0 %v1712_v46 }
 0x33b   :  { %968 = vmatpush.bf16.msrb.mxu0 %v1711_v47  ;;  %v1729_v47 = vld [vmem:[#allocation14 + $0x98] sm:$0xff] }
 0x33c   :  { %1202 = vmatpush.bf16.msrb.mxu3 %v1729_v47 }
 0x33f   :  { %969 = vmatpush.bf16.msrb.mxu0 %v1710_v48 }
 0x3a9   :  { %v663_v51 = vpop.f32.mrf.mxu0 }
 0x3aa   :  { %v664_v53 = vadd.f32 %v1761_v52, %v663_v51 }
 0x3ac   :  { %v668_v56 = vmax.f32 %v664_v53, 0.0 }
 0x3b1   :  { %v665_v54 = vpop.f32.mrf.mxu0 }
 0x3b2   :  { %v666_v55 = vadd.f32 %v1761_v52, %v665_v54 }
 0x3b4   :  { %v669_v57 = vmax.f32 %v666_v55, 0.0  ;;  %v1725_v55 = vld [vmem:[#allocation10 + $0xb8] sm:$0xff] }
 0x3b6   :  { %v672_v58 = vadd.f32 %v669_v57, %v668_v56 }
 0x3b8   :  { %v673_v59 = vrot.slane %v672_v58, 4 }
 0x3ba   :  { %v674_v60 = vadd.f32 %v673_v59, %v672_v58  ;;  %v1722_v58 = vld [vmem:[#allocation10 + $0xa0] sm:$0xff]  ;;  %v1721_v59 = vld [vmem:[#allocation10 + $0x98] sm:$0xff] }
 0x3bc   :  { %v675_v61 = vrot.slane %v674_v60, 2 }
 0x3be   :  { %v676_v62 = vadd.f32 %v675_v61, %v674_v60  ;;  %v1720_v60 = vld [vmem:[#allocation10 + $0x90] sm:$0xff]  ;;  %v1719_v61 = vld [vmem:[#allocation10 + $0x88] sm:$0xff] }
 0x3c0   :  { %v677_v63 = vrot.slane %v676_v62, 1 }
 0x3c2   :  { %v678_v0 = vadd.f32 %v677_v63, %v676_v62  ;;  %v1718_v62 = vld [vmem:[#allocation10 + $0x80] sm:$0xff] }
 0x3c4   :  { %v679_v1 = vmul.f32 0.0625, %v678_v0 }
 0x3c6   :  { %v680_v3 = vsub.f32 %v668_v56, %v679_v1  ;;  %v681_v4 = vsub.f32 %v669_v57, %v679_v1  ;;  %v1724_v56 = vld [vmem:[#allocation10 + $0xb0] sm:$0xff]  ;;  %v1723_v57 = vld [vmem:[#allocation10 + $0xa8] sm:$0xff] }
 0x3c8   :  { %v684_v5 = vmul.f32 %v680_v3, %v680_v3  ;;  %v685_v6 = vmul.f32 %v681_v4, %v681_v4 }
 0x3ca   :  { %v686_v7 = vadd.f32 %v685_v6, %v684_v5 }
 0x3cc   :  { %v687_v8 = vrot.slane %v686_v7, 4 }
 0x3ce   :  { %v688_v9 = vadd.f32 %v687_v8, %v686_v7 }
 0x3d0   :  { %v689_v10 = vrot.slane %v688_v9, 2 }
 0x3d2   :  { %v690_v12 = vadd.f32 %v689_v10, %v688_v9 }
 0x3d4   :  { %v691_v13 = vrot.slane %v690_v12, 1 }
 0x3d6   :  { %v692_v14 = vadd.f32 %v691_v13, %v690_v12  ;;  %v1765_v12 = vld [vmem:[#allocation11 + $0x2] ss:$0 sm:$0xff] }
 0x3d8   :  { %v693_v15 = vmul.f32 0.0625, %v692_v14 }
 0x3da   :  { %v694_v16 = vadd.f32 1e-05, %v693_v15 }
 0x3dc   :  { %1772 = vrsqrt.f32 %v694_v16  ;;  %vm701_vm5 = vweird.f32 %v694_v16 }
 0x3e2   :  { %v1773_v17 = vpop.eup %1772 }
 0x3e3   :  { %v696_v18 = vmul.f32 %v1773_v17, %v694_v16  ;;  %vm702_vm4 = vweird.f32 %v1773_v17 }
 0x3e4   :  { %vm703_vm6 = vmor %vm701_vm5, %vm702_vm4 }
 0x3e5   :  { %v697_v19 = vmul.f32 %v1773_v17, %v696_v18 }
 0x3e7   :  { %v698_v20 = vmul.f32 0.5, %v697_v19 }
 0x3e9   :  { %v699_v21 = vsub.f32 1.5, %v698_v20 }
 0x3eb   :  { %v700_v23 = vmul.f32 %v1773_v17, %v699_v21 }
 0x3ed   :  { %v704_v27 = vsel %vm703_vm6, %v1773_v17, %v700_v23 }
 0x3ee   :  { %v705_v28 = vmul.f32 %v704_v27, %v680_v3  ;;  %v706_v29 = vmul.f32 %v704_v27, %v681_v4  ;;  %v1764_v3 = vld [vmem:[%s2216_s4 + $0x2] ss:$0 sm:$0xff] }
 0x3f0   :  { %v712_v32 = vmul.f32 %v1762_v26, %v705_v28  ;;  %v713_v33 = vmul.f32 %v1762_v26, %v706_v29 }
 0x3f2   :  { %v719_v34 = vadd.f32 %v1763_v30, %v712_v32  ;;  %v720_v35 = vadd.f32 %v1763_v30, %v713_v33 }
 0x3f4   :  { %v723_v37 = vpack.c.bf16 %v720_v35, %v719_v34 }
 0x3f6   :  { %731 = vmatpush.bf16.msrb.mxu1 %v723_v37 }
 0x3f9   :  { %1463 = vmatmul.msk.bf16.vlgmr.msrb.gmra.mxu1 %vm209_vm0, %v2173_v11 }
 0x3fa   :  { %884 = vmatpush.bf16.msra.mxu1 %v723_v37 }
 0x3fe   :  { %1049 = vmatpush.bf16.msrb.mxu1 %v1725_v55  ;;  %v1767_v55 = vld [vmem:[#allocation13 + $0x2] ss:$0 sm:$0xff] }
 0x402   :  { %1050 = vmatpush.bf16.msrb.mxu1 %v1724_v56  ;;  %v1727_v56 = vld [vmem:[#allocation14 + $0x88] sm:$0xff] }
 0x406   :  { %1051 = vmatpush.bf16.msrb.mxu1 %v1723_v57 }
 0x409   :  { %1528 = vmatmul.msk.bf16.vlgmr.msra.gmra.mxu1 %vm209_vm0, %v2163_v2 }
 0x40a   :  { %1052 = vmatpush.bf16.msrb.mxu1 %v1722_v58 }
 0x40e   :  { %1053 = vmatpush.bf16.msrb.mxu1 %v1721_v59 }
 0x412   :  { %1054 = vmatpush.bf16.msrb.mxu1 %v1720_v60 }
 0x416   :  { %1055 = vmatpush.bf16.msrb.mxu1 %v1719_v61 }
 0x41a   :  { %1056 = vmatpush.bf16.msrb.mxu1 %v1718_v62  ;;  %v1726_v62 = vld [vmem:[#allocation14 + $0x80] sm:$0xff] }
 0x476   :  { %v733_v50 = vpop.f32.mrf.mxu1 }
 0x477   :  { %v737_v51 = vpack.c.bf16 %v733_v50, %v733_v50 }
 0x479   :  { %811 = vmatmul.bf16.vlgmr.msrb.gmra.mxu2 %v737_v51  ;;  %v1728_v51 = vld [vmem:[#allocation14 + $0x90] sm:$0xff] }
 0x47a   :  { %1203 = vmatpush.bf16.msrb.mxu3 %v1728_v51 }
 0x47e   :  { %v735_v2 = vpop.f32.mrf.mxu1  ;;  %1204 = vmatpush.bf16.msrb.mxu3 %v1727_v56 }
 0x47f   :  { %v1766_v2 = vld [vmem:[%s2219_s7 + $0x2] ss:$0 sm:$0xff] }
 0x482   :  { %1205 = vmatpush.bf16.msrb.mxu3 %v1726_v62 }
 0x486   :  { %v886_v52 = vpop.f32.mrf.mxu1 }
 0x48e   :  { %v888_v53 = vpop.f32.mrf.mxu1 }
 0x48f   :  { %v891_v54 = vpack.c.bf16 %v888_v53, %v886_v52 }
 0x491   :  { %970 = vmatmul.bf16.vlgmr.msrb.gmra.mxu0 %v891_v54 }
 0x4fc   :  { %v2191_v63 = vpop.f32.mrf.mxu2 }
 0x504   :  { %v814_v0 = vpop.f32.mrf.mxu2 }
 0x505   :  { %v1741_v0 = vld [vmem:[#allocation16 + $0x38] sm:$0xff] }
 0x506   :  { %1287 = vmatpush.bf16.msra.mxu2 %v1741_v0 }
 0x50e   :  { %v971_v1 = vpop.f32.mrf.mxu0 }
 0x50f   :  { %v972_v4 = vadd.f32 %v1764_v3, %v971_v1  ;;  %v1740_v1 = vld [vmem:[#allocation16 + $0x30] sm:$0xff] }
 0x510   :  { %1288 = vmatpush.bf16.msra.mxu2 %v1740_v1 }
 0x511   :  { %v976_v7 = vmax.f32 %v972_v4, 0.0  ;;  %v1738_v4 = vld [vmem:[#allocation16 + $0x20] sm:$0xff] }
 0x516   :  { %v973_v5 = vpop.f32.mrf.mxu0 }
 0x517   :  { %v974_v6 = vadd.f32 %v1764_v3, %v973_v5  ;;  %v1739_v3 = vld [vmem:[#allocation16 + $0x28] sm:$0xff]  ;;  %v1737_v5 = vld [vmem:[#allocation16 + $0x18] sm:$0xff] }
 0x518   :  { %1289 = vmatpush.bf16.msra.mxu2 %v1739_v3 }
 0x519   :  { %v977_v8 = vmax.f32 %v974_v6, 0.0  ;;  %v1736_v6 = vld [vmem:[#allocation16 + $0x10] sm:$0xff] }
 0x51b   :  { %v978_v9 = vpack.c.bf16 %v977_v8, %v976_v7 }
 0x51c   :  { %1290 = vmatpush.bf16.msra.mxu2 %v1738_v4 }
 0x51d   :  { %1057 = vmatmul.bf16.vlgmr.msrb.gmra.mxu1 %v978_v9 }
 0x520   :  { %1291 = vmatpush.bf16.msra.mxu2 %v1737_v5 }
 0x524   :  { %1292 = vmatpush.bf16.msra.mxu2 %v1736_v6 }
 0x59a   :  { %v1058_v10 = vpop.f32.mrf.mxu1 }
 0x59b   :  { %v1059_v13 = vadd.f32 %v1765_v12, %v1058_v10  ;;  %v1735_v10 = vld [vmem:[#allocation16 + $0x8] sm:$0xff] }
 0x59c   :  { %1293 = vmatpush.bf16.msra.mxu2 %v1735_v10 }
 0x59d   :  { %v1063_v16 = vmax.f32 %v1059_v13, 0.0  ;;  %v1768_v13 = vld [vmem:[%s2222_s10] ss:$0 sm:$0xff] }
 0x5a2   :  { %v1060_v14 = vpop.f32.mrf.mxu1 }
 0x5a3   :  { %v1061_v15 = vadd.f32 %v1765_v12, %v1060_v14  ;;  %v874_v12 = vadd.f32 %v2182_v49, %v2191_v63 }
 0x5a5   :  { %v1064_v17 = vmax.f32 %v1061_v15, 0.0 }
 0x5a7   :  { %v1067_v18 = vadd.f32 %v1064_v17, %v1063_v16 }
 0x5a9   :  { %v1068_v19 = vrot.slane %v1067_v18, 4 }
 0x5ab   :  { %v1069_v20 = vadd.f32 %v1068_v19, %v1067_v18 }
 0x5ad   :  { %v1070_v21 = vrot.slane %v1069_v20, 2 }
 0x5af   :  { %v1071_v22 = vadd.f32 %v1070_v21, %v1069_v20  ;;  %v1769_v20 = vld [vmem:[%s2224_s12] ss:$0 sm:$0xff] }
 0x5b1   :  { %v1072_v23 = vrot.slane %v1071_v22, 1 }
 0x5b3   :  { %v1073_v24 = vadd.f32 %v1072_v23, %v1071_v22 }
 0x5b5   :  { %v1074_v25 = vmul.f32 0.0625, %v1073_v24 }
 0x5b7   :  { %v1075_v26 = vsub.f32 %v1063_v16, %v1074_v25  ;;  %v1076_v27 = vsub.f32 %v1064_v17, %v1074_v25 }
 0x5b9   :  { %v1079_v28 = vmul.f32 %v1075_v26, %v1075_v26  ;;  %v1080_v29 = vmul.f32 %v1076_v27, %v1076_v27 }
 0x5bb   :  { %v1081_v30 = vadd.f32 %v1080_v29, %v1079_v28 }
 0x5bd   :  { %v1082_v31 = vrot.slane %v1081_v30, 4 }
 0x5bf   :  { %v1083_v32 = vadd.f32 %v1082_v31, %v1081_v30 }
 0x5c1   :  { %v1084_v33 = vrot.slane %v1083_v32, 2 }
 0x5c3   :  { %v1085_v34 = vadd.f32 %v1084_v33, %v1083_v32 }
 0x5c5   :  { %v1086_v35 = vrot.slane %v1085_v34, 1 }
 0x5c7   :  { %v1087_v36 = vadd.f32 %v1086_v35, %v1085_v34 }
 0x5c9   :  { %v1088_v37 = vmul.f32 0.0625, %v1087_v36 }
 0x5cb   :  { %v1089_v39 = vadd.f32 1e-05, %v1088_v37 }
 0x5cd   :  { %1774 = vrsqrt.f32 %v1089_v39  ;;  %vm1096_vm8 = vweird.f32 %v1089_v39 }
 0x5d3   :  { %v1775_v42 = vpop.eup %1774 }
 0x5d4   :  { %v1091_v43 = vmul.f32 %v1775_v42, %v1089_v39  ;;  %vm1097_vm7 = vweird.f32 %v1775_v42 }
 0x5d5   :  { %vm1098_vm9 = vmor %vm1096_vm8, %vm1097_vm7 }
 0x5d6   :  { %v1092_v45 = vmul.f32 %v1775_v42, %v1091_v43 }
 0x5d8   :  { %v1093_v46 = vmul.f32 0.5, %v1092_v45 }
 0x5da   :  { %v1094_v48 = vsub.f32 1.5, %v1093_v46 }
 0x5dc   :  { %v1095_v50 = vmul.f32 %v1775_v42, %v1094_v48 }
 0x5de   :  { %v1099_v52 = vsel %vm1098_vm9, %v1775_v42, %v1095_v50 }
 0x5df   :  { %v1100_v53 = vmul.f32 %v1099_v52, %v1075_v26  ;;  %v1101_v54 = vmul.f32 %v1099_v52, %v1076_v27 }
 0x5e1   :  { %v1107_v57 = vmul.f32 %v1766_v2, %v1100_v53  ;;  %v1108_v58 = vmul.f32 %v1766_v2, %v1101_v54 }
 0x5e3   :  { %v1115_v59 = vadd.f32 %v1767_v55, %v1108_v58  ;;  %v1114_v60 = vadd.f32 %v1767_v55, %v1107_v57 }
 0x5e5   :  { %v1118_v61 = vpack.c.bf16 %v1115_v59, %v1114_v60 }
 0x5e7   :  { %1126 = vmatpush.bf16.msra.mxu0 %v1118_v61 }
 0x5ea   :  { %1595 = vmatmul.msk.bf16.vlgmr.msra.gmra.mxu0 %vm209_vm0, %v2173_v11  ;;  %v1734_v11 = vld [vmem:[#allocation16] sm:$0xff] }
 0x5eb   :  { %1294 = vmatpush.bf16.msra.mxu2 %v1734_v11 }
 0x667   :  { %v1128_v7 = vpop.f32.mrf.mxu0 }
 0x668   :  { %v1132_v8 = vpack.c.bf16 %v1128_v7, %v1128_v7 }
 0x66a   :  { %1206 = vmatmul.bf16.vlgmr.msrb.gmra.mxu3 %v1132_v8 }
 0x66f   :  { %v1130_v9 = vpop.f32.mrf.mxu0 }
 0x6ed   :  { %v1207_v14 = vpop.f32.mrf.mxu3 }
 0x6ee   :  { %v1211_v15 = vadd.f32 %v1207_v14, %v874_v12 }
 0x6f0   :  { %v1216_v16 = vadd.f32 %v1768_v13, %v1211_v15 }
 0x6f2   :  { %v1217_v17 = vmax.f32 %v1216_v16, 0.0 }
 0x6f4   :  { %v1218_v18 = vpack.c.bf16 %v1217_v17, %v1217_v17 }
 0x6f5   :  { %v1209_v19 = vpop.f32.mrf.mxu3 }
 0x6f6   :  { %1295 = vmatmul.bf16.vlgmr.msra.gmra.mxu2 %v1218_v18 }
 0x779   :  { %v1296_v49 = vpop.f32.mrf.mxu2 }
 0x77a   :  { %v1297_v63 = vadd.f32 %v1769_v20, %v1296_v49 }
 0x77c   :  { %1300 = vst [vmem:[#allocation17] sm:$0xff] %v1297_v63 }
 0x77d   :  { %1311 = dma.vmem_to_hbm [thread:$0]  %s1307_s24, 128, %s1309_s6, [#allocation4]  }
 0x781   :  { %v1298_v21 = vpop.f32.mrf.mxu2 }
 0x782   :  { %2026 = dma.done.wait [#allocation4], 128  }
 0x783   :  { %2027 = vsyncadd [#allocation4], 4294967168 }
 0x784   :  { %1316 = vsyncpa [#allocation3], 1 }
 0x785   :  { %1317 = vsyncpa [#allocation6], 1 }
 0x786   :  { %1318 = vsyncpa [#allocation9], 1 }
 0x787   :  { %1319 = vsyncpa [#allocation12], 1 }
 0x788   :  { %1320 = vsyncpa [#allocation15], 1 }
 0x789   :  { %1321 = vsyncpa [#allocation4], 1 }

</bundles_post_ra>
